<compile_context>
chip_gen: v6e
topology: v6e:2x2x1
jax: 0.10.0
libtpu: 0.0.40
codegen_flags: <defaults>
</compile_context>

<pallas_src>
import jax
import jax.numpy as jnp
from jax.experimental import pallas as pl
from jax.experimental.pallas import tpu as pltpu

VTH = 1.0
ALPHA = 1.0
EPS = 1e-5
TM_A_SHALLOW = 512          # pass-A row tile when K <= 2304
TM_A_DEEP = 256             # pass-A row tile when K  > 2304 (v5e VMEM budget)
TM_B_CAP = 1024             # pass-B row tile cap (mem-bound epilogue, amortize per-step overhead)
K_PAD_MAX_OVERHEAD = 0.15   # pad K to a multiple of 128 only if <=15% extra patch bytes
VMEM_LIMIT_BYTES = 40 * 1024 * 1024  # < v7x 64 MiB physical; fine on v5e/v6e too


# ---------------------------------------------------------------------------
# Pallas kernels
# ---------------------------------------------------------------------------
def _conv_stats_kernel(p_ref, w_ref, y_ref, s_ref):
    # Pass A: im2col-GEMM tile (bf16 operands, f32 MXU accumulate) + per-tile
    # per-channel partial sums for tdBatchNorm.  y is emitted as bf16.
    acc = jnp.dot(p_ref[...], w_ref[...], preferred_element_type=jnp.float32)
    s_ref[0:1, :] = jnp.sum(acc, axis=0, keepdims=True)
    s_ref[1:2, :] = jnp.sum(acc * acc, axis=0, keepdims=True)
    y_ref[...] = acc.astype(y_ref.dtype)


def _make_conv_ds_stats_kernel(c0, c1):
    # Pass A with the 1x1-stride-s downsample GEMM fused: the downsample patches
    # are the centre-tap columns [c0, c1) of the 3x3 patch tile already in VMEM.
    def kernel(p_ref, w_ref, wd_ref, y_ref, yd_ref, s_ref, sd_ref):
        acc = jnp.dot(p_ref[...], w_ref[...], preferred_element_type=jnp.float32)
        s_ref[0:1, :] = jnp.sum(acc, axis=0, keepdims=True)
        s_ref[1:2, :] = jnp.sum(acc * acc, axis=0, keepdims=True)
        y_ref[...] = acc.astype(y_ref.dtype)

        accd = jnp.dot(p_ref[:, c0:c1], wd_ref[...],
                       preferred_element_type=jnp.float32)
        sd_ref[0:1, :] = jnp.sum(accd, axis=0, keepdims=True)
        sd_ref[1:2, :] = jnp.sum(accd * accd, axis=0, keepdims=True)
        yd_ref[...] = accd.astype(yd_ref.dtype)
    return kernel


def _bn_spike_kernel(y_ref, sc_ref, sh_ref, o_ref):
    # Pass B: tdBatchNorm apply + LIF Heaviside spike (bf16 output, exact {0,1}).
    v = y_ref[...].astype(jnp.float32) * sc_ref[...] + sh_ref[...]
    o_ref[...] = (v > VTH).astype(o_ref.dtype)


def _bn_add_spike_kernel(y_ref, sc_ref, sh_ref, iy_ref, isc_ref, ish_ref, o_ref):
    # Pass B: tdBN apply + residual add (identity has its own folded BN affine;
    # scale=1 / shift=0 for a plain spike identity) + LIF spike, fused.
    v = y_ref[...].astype(jnp.float32) * sc_ref[...] + sh_ref[...]
    v = v + iy_ref[...].astype(jnp.float32) * isc_ref[...] + ish_ref[...]
    o_ref[...] = (v > VTH).astype(o_ref.dtype)


def _avgpool_kernel(x_ref, o_ref):
    # x block: (1, H*W, C) -> spatial mean (AdaptiveAvgPool2d((1,1))).
    o_ref[...] = jnp.mean(x_ref[...].astype(jnp.float32), axis=1, keepdims=True)


def _linear_spike_kernel(x_ref, w_ref, b_ref, o_ref):
    y = jnp.dot(x_ref[...].astype(jnp.bfloat16), w_ref[...],
                preferred_element_type=jnp.float32) + b_ref[...]
    o_ref[...] = (y > VTH).astype(o_ref.dtype)


def _linear_kernel(x_ref, w_ref, b_ref, o_ref):
    y = jnp.dot(x_ref[...].astype(jnp.bfloat16), w_ref[...],
                preferred_element_type=jnp.float32) + b_ref[...]
    o_ref[...] = y


# ---------------------------------------------------------------------------
# pallas_call helpers
# ---------------------------------------------------------------------------
_VMEM = pl.BlockSpec(memory_space=pltpu.MemorySpace.VMEM)
_PARALLEL_1D = pltpu.CompilerParams(dimension_semantics=("parallel",))


def _small_call(kernel, out_shape, out_dtype, *args):
    # Gridless whole-array call — only for the tiny fc tensors.
    return pl.pallas_call(
        kernel,
        out_shape=jax.ShapeDtypeStruct(out_shape, out_dtype),
        in_specs=[_VMEM] * len(args),
        out_specs=_VMEM,
    )(*args)


def _round_up(n, m):
    return ((n + m - 1) // m) * m


def _pick_tm_a(rows, k):
    cap = TM_A_SHALLOW if k <= 2304 else TM_A_DEEP
    # shrink so there are >=2 row tiles whenever rows allows it (v7x megacore),
    # keeping the tile a multiple of 8 sublanes.
    return max(8, min(cap, _round_up((rows + 1) // 2, 8)))


def _pick_tm_b(rows_pad, tm_a):
    # largest multiple of tm_a that divides rows_pad, <= TM_B_CAP, and still
    # leaves >=2 grid steps (no re-padding of y between pass A and pass B).
    n_a = rows_pad // tm_a
    cands = [k for k in range(1, n_a + 1)
             if n_a % k == 0 and tm_a * k <= TM_B_CAP and n_a // k >= 2]
    return tm_a * (max(cands) if cands else 1)


# ---------------------------------------------------------------------------
# JAX glue: im2col, conv pass A, BN scale/shift, BN/residual/spike pass B
# ---------------------------------------------------------------------------
def _im2col(x, kh, kw, stride, pad):
    # x: (B, H, W, C) bf16 -> patches (B*Ho*Wo, kh*kw*C), tap-major / channel-minor.
    if pad:
        x = jnp.pad(x, ((0, 0), (pad, pad), (pad, pad), (0, 0)))
    B, Hp, Wp, C = x.shape
    Ho = (Hp - kh) // stride + 1
    Wo = (Wp - kw) // stride + 1
    cols = []
    for i in range(kh):
        for j in range(kw):
            cols.append(x[:, i:i + stride * (Ho - 1) + 1:stride,
                          j:j + stride * (Wo - 1) + 1:stride, :])
    patches = jnp.stack(cols, axis=3)                        # (B, Ho, Wo, kh*kw, C)
    return patches.reshape(B * Ho * Wo, kh * kw * C), Ho, Wo


def conv_pass_a(x, w4, stride, pad, wd4=None):
    """Conv (no bias) as a row-tiled MXU GEMM with per-tile BN partial stats.

    If wd4 (1x1 stride-s downsample weights) is given, that GEMM is fused into the
    same kernel using the centre-tap columns of the 3x3 patch tile.
    """
    kh, kw, cin, cout = w4.shape
    B = x.shape[0]
    patches, Ho, Wo = _im2col(x.astype(jnp.bfloat16), kh, kw, stride, pad)
    rows, K = patches.shape

    # Zero-pad the contraction dim to a multiple of 128 when it is cheap.
    K_pad = _round_up(K, 128)
    if K_pad != K and (K_pad - K) > K_PAD_MAX_OVERHEAD * K:
        K_pad = K
    if K_pad != K:
        patches = jnp.pad(patches, ((0, 0), (0, K_pad - K)))

    tm = _pick_tm_a(rows, K_pad)
    rows_pad = _round_up(rows, tm)
    n_tiles = rows_pad // tm
    if rows_pad != rows:
        patches = jnp.pad(patches, ((0, rows_pad - rows), (0, 0)))

    w2 = w4.reshape(K, cout).astype(jnp.bfloat16)
    if K_pad != K:
        w2 = jnp.pad(w2, ((0, K_pad - K), (0, 0)))

    p_spec = pl.BlockSpec((tm, K_pad), lambda i: (i, 0))
    w_spec = pl.BlockSpec((K_pad, cout), lambda i: (0, 0))    # VMEM-resident weights
    y_spec = pl.BlockSpec((tm, cout), lambda i: (i, 0))
    s_spec = pl.BlockSpec((8, cout), lambda i: (i, 0))
    cparams = pltpu.CompilerParams(dimension_semantics=("parallel",),
                                   vmem_limit_bytes=VMEM_LIMIT_BYTES)

    common = dict(rows=rows, rows_pad=rows_pad, tm=tm, B=B, Ho=Ho, Wo=Wo, cout=cout)

    if wd4 is None:
        y, stats = pl.pallas_call(
            _conv_stats_kernel,
            grid=(n_tiles,),
            in_specs=[p_spec, w_spec],
            out_specs=(y_spec, s_spec),
            out_shape=(jax.ShapeDtypeStruct((rows_pad, cout), jnp.bfloat16),
                       jax.ShapeDtypeStruct((8 * n_tiles, cout), jnp.float32)),
            compiler_params=cparams,
        )(patches, w2)
        common.update(y=y, stats=stats.reshape(n_tiles, 8, cout))
        return common

    # Fused downsample (1x1, same stride, no pad): centre-tap columns of the patch.
    cd_out = wd4.shape[3]
    wd2 = wd4.reshape(cin, cd_out).astype(jnp.bfloat16)
    center = (kh // 2) * kw + (kw // 2)
    c0, c1 = center * cin, (center + 1) * cin
    wd_spec = pl.BlockSpec((cin, cd_out), lambda i: (0, 0))
    yd_spec = pl.BlockSpec((tm, cd_out), lambda i: (i, 0))
    sd_spec = pl.BlockSpec((8, cd_out), lambda i: (i, 0))

    y, yd, stats, stats_d = pl.pallas_call(
        _make_conv_ds_stats_kernel(c0, c1),
        grid=(n_tiles,),
        in_specs=[p_spec, w_spec, wd_spec],
        out_specs=(y_spec, yd_spec, s_spec, sd_spec),
        out_shape=(jax.ShapeDtypeStruct((rows_pad, cout), jnp.bfloat16),
                   jax.ShapeDtypeStruct((rows_pad, cd_out), jnp.bfloat16),
                   jax.ShapeDtypeStruct((8 * n_tiles, cout), jnp.float32),
                   jax.ShapeDtypeStruct((8 * n_tiles, cd_out), jnp.float32)),
        compiler_params=cparams,
    )(patches, w2, wd2)
    common.update(y=y, stats=stats.reshape(n_tiles, 8, cout),
                  yd=yd, stats_d=stats_d.reshape(n_tiles, 8, cd_out))
    return common


def _bn_scale_shift(stats, rows, gamma, beta):
    # tdBatchNorm training-mode batch stats over (N, T, H, W) per channel.
    total = jnp.sum(stats[:, 0, :], axis=0)
    total_sq = jnp.sum(stats[:, 1, :], axis=0)
    n = jnp.float32(rows)
    mean = total / n
    var = jnp.maximum(total_sq / n - mean * mean, 0.0)
    scale = (ALPHA * VTH) * gamma * jax.lax.rsqrt(var + EPS)
    shift = beta - mean * scale
    return scale.reshape(1, -1), shift.reshape(1, -1)


def bn_spike_apply(conv, gamma, beta, identity=None, ident_scale=None,
                   ident_shift=None):
    """Pass B: tdBN apply (+ optional residual whose BN is folded into an affine)
    + LIF spike, tiled with a larger row tile than pass A."""
    y, rows, rows_pad, cout = conv['y'], conv['rows'], conv['rows_pad'], conv['cout']
    scale, shift = _bn_scale_shift(conv['stats'], rows, gamma, beta)

    tm_b = _pick_tm_b(rows_pad, conv['tm'])
    n_b = rows_pad // tm_b
    in_tile = pl.BlockSpec((tm_b, cout), lambda i: (i, 0))
    out_tile = pl.BlockSpec((tm_b, cout), lambda i: (i, 0))
    vec_spec = pl.BlockSpec((1, cout), lambda i: (0, 0))

    if identity is None:
        out = pl.pallas_call(
            _bn_spike_kernel,
            grid=(n_b,),
            in_specs=[in_tile, vec_spec, vec_spec],
            out_specs=out_tile,
            out_shape=jax.ShapeDtypeStruct((rows_pad, cout), jnp.bfloat16),
            compiler_params=_PARALLEL_1D,
        )(y, scale, shift)
    else:
        idy = identity.astype(jnp.bfloat16)
        if idy.shape[0] != rows_pad:
            idy = idy[:rows]
            if rows_pad != rows:
                idy = jnp.pad(idy, ((0, rows_pad - rows), (0, 0)))
        if ident_scale is None:
            ident_scale = jnp.ones((1, cout), jnp.float32)
            ident_shift = jnp.zeros((1, cout), jnp.float32)
        out = pl.pallas_call(
            _bn_add_spike_kernel,
            grid=(n_b,),
            in_specs=[in_tile, vec_spec, vec_spec,
                      pl.BlockSpec((tm_b, cout), lambda i: (i, 0)),
                      vec_spec, vec_spec],
            out_specs=out_tile,
            out_shape=jax.ShapeDtypeStruct((rows_pad, cout), jnp.bfloat16),
            compiler_params=_PARALLEL_1D,
        )(y, scale, shift, idy, ident_scale, ident_shift)

    return out[:rows].reshape(conv['B'], conv['Ho'], conv['Wo'], cout)


def avgpool(x):
    # AdaptiveAvgPool2d((1,1)) as a per-image gridded kernel (no whole-tensor VMEM load).
    B, H, W, C = x.shape
    xr = x.reshape(B, H * W, C)
    out = pl.pallas_call(
        _avgpool_kernel,
        grid=(B,),
        in_specs=[pl.BlockSpec((1, H * W, C), lambda b: (b, 0, 0))],
        out_specs=pl.BlockSpec((1, 1, C), lambda b: (b, 0, 0)),
        out_shape=jax.ShapeDtypeStruct((B, 1, C), jnp.float32),
        compiler_params=_PARALLEL_1D,
    )(xr)
    return out.reshape(B, C)


# ---------------------------------------------------------------------------
# BasicBlock / ResNet forward
# ---------------------------------------------------------------------------
def basic_block(x, p):
    stride = p['stride']
    has_ds = 'wd' in p

    # conv1 (+ fused 1x1 downsample GEMM when present), then tdBN + spike1.
    conv1 = conv_pass_a(x, p['w1'], stride, 1, wd4=p['wd'] if has_ds else None)
    s1 = bn_spike_apply(conv1, p['g1'], p['b1'])

    # conv2, then tdBN + residual add + spike2 (identity BN folded into the add).
    conv2 = conv_pass_a(s1, p['w2'], 1, 1)
    if has_ds:
        sc_d, sh_d = _bn_scale_shift(conv1['stats_d'], conv1['rows'],
                                     p['gd'], p['bd'])
        identity, isc, ish = conv1['yd'], sc_d, sh_d
    else:
        identity = x.reshape(-1, x.shape[-1])       # spikes {0,1}, bf16
        isc = ish = None
    return bn_spike_apply(conv2, p['g2'], p['b2'], identity=identity,
                          ident_scale=isc, ident_shift=ish)


def resnet_forward(params, x_nchw, T=1):
    N, C, H, W = x_nchw.shape
    # add_dimention: (N,C,H,W) -> (N,T,C,H,W); tdLayer folds (N,T) -> B = N*T.
    x = jnp.broadcast_to(x_nchw[:, None], (N, T, C, H, W)).reshape(N * T, C, H, W)
    x = jnp.transpose(x, (0, 2, 3, 1))                       # NHWC

    # stem: conv1_s (7x7 s2 p3 + tdBN) + LIF spike.
    stem = conv_pass_a(x, params['stem_w'], 2, 3)
    x = bn_spike_apply(stem, params['stem_g'], params['stem_b'])

    for layer in params['layers']:
        for blk in layer:
            x = basic_block(x, blk)

    # avgpool -> flatten(x, 2)
    x = avgpool(x)                                            # (B, 512) f32

    # fc1_s + LIF spike (fused), then fc2_s.
    x = _small_call(_linear_spike_kernel, (x.shape[0], params['fc1_w'].shape[1]),
                    jnp.bfloat16, x, params['fc1_w'], params['fc1_b'].reshape(1, -1))
    x = _small_call(_linear_kernel, (x.shape[0], params['fc2_w'].shape[1]),
                    jnp.float32, x, params['fc2_w'], params['fc2_b'].reshape(1, -1))

    return x.reshape(N, T, -1)


# ---------------------------------------------------------------------------
# Deterministic parameter init (ResNet(BasicBlock, [1,1,1,1]), num_classes=10)
# ---------------------------------------------------------------------------
def init_params(key, layers=(1, 1, 1, 1), num_classes=10):
    keys = iter(jax.random.split(key, 64))

    def conv_w(kh, kw, cin, cout):
        std = (2.0 / (kh * kw * cin)) ** 0.5
        w = jax.random.normal(next(keys), (kh, kw, cin, cout), jnp.float32) * std
        return w.astype(jnp.bfloat16)      # bf16 weights: MXU-native, half the HBM read

    params = {
        'stem_w': conv_w(7, 7, 3, 64),
        'stem_g': jnp.ones((64,), jnp.float32),
        'stem_b': jnp.zeros((64,), jnp.float32),
    }

    inplanes = 64
    planes_list = [64, 128, 256, 512]
    strides = [1, 2, 2, 2]
    all_layers = []
    for planes, nblocks, lstride in zip(planes_list, layers, strides):
        blocks = []
        for bi in range(nblocks):
            stride = lstride if bi == 0 else 1
            blk = {
                'stride': stride,
                'w1': conv_w(3, 3, inplanes, planes),
                'g1': jnp.ones((planes,), jnp.float32),
                'b1': jnp.zeros((planes,), jnp.float32),
                'w2': conv_w(3, 3, planes, planes),
                'g2': jnp.ones((planes,), jnp.float32),
                'b2': jnp.zeros((planes,), jnp.float32),
            }
            if stride != 1 or inplanes != planes:
                blk['wd'] = conv_w(1, 1, inplanes, planes)
                blk['gd'] = jnp.ones((planes,), jnp.float32)
                blk['bd'] = jnp.zeros((planes,), jnp.float32)
            blocks.append(blk)
            inplanes = planes
        all_layers.append(blocks)
    params['layers'] = all_layers

    params['fc1_w'] = (jax.random.normal(next(keys), (512, 256), jnp.float32)
                       * (1.0 / 512) ** 0.5).astype(jnp.bfloat16)
    params['fc1_b'] = jnp.zeros((256,), jnp.float32)
    params['fc2_w'] = (jax.random.normal(next(keys), (256, num_classes), jnp.float32)
                       * (1.0 / 256) ** 0.5).astype(jnp.bfloat16)
    params['fc2_b'] = jnp.zeros((num_classes,), jnp.float32)
    return params


if __name__ == "__main__":
    key = jax.random.PRNGKey(0)
    pkey, xkey = jax.random.split(key)
    params = init_params(pkey, layers=(1, 1, 1, 1), num_classes=10)

    # Small input consistent with the module: NCHW, 3 input channels (conv1 expects 3).
    x = jax.random.normal(xkey, (2, 3, 16, 16), jnp.float32)

    out = resnet_forward(params, x, T=1)
    out = jax.block_until_ready(out)
    assert out.shape == (2, 1, 10), out.shape
    print("KERNEL_OK")
</pallas_src>

<mosaic_0001>
module attributes {stable_mosaic.version = 11 : i64} {
  func.func @_conv_stats_kernel(%arg0: i32, %arg1: memref<64x147xbf16, #tpu.memory_space<vmem>>, %arg2: memref<147x64xbf16, #tpu.memory_space<vmem>>, %arg3: memref<64x64xbf16, #tpu.memory_space<vmem>>, %arg4: memref<8x64xf32, #tpu.memory_space<vmem>>) attributes {dimension_semantics = [#tpu.dimension_semantics<parallel>], iteration_bounds = array<i64: 2>, scalar_prefetch = 0 : i64, scratch_operands = 0 : i64, tpu.core_type = #tpu.core_type<tc>, window_params = [{transform_indices = @transform_0, window_bounds = array<i64: 64, 147>}, {pipeline_mode = #tpu.pipeline_mode<synchronous>, transform_indices = @transform_1, window_bounds = array<i64: 147, 64>}, {transform_indices = @transform_2, window_bounds = array<i64: 64, 64>}, {transform_indices = @transform_3, window_bounds = array<i64: 8, 64>}]} {
    %c0 = arith.constant 0 : index
    %c0_0 = arith.constant 0 : index
    %0 = vector.load %arg1[%c0, %c0_0] : memref<64x147xbf16, #tpu.memory_space<vmem>>, vector<64x147xbf16>
    %c0_1 = arith.constant 0 : index
    %c0_2 = arith.constant 0 : index
    %1 = vector.load %arg2[%c0_1, %c0_2] : memref<147x64xbf16, #tpu.memory_space<vmem>>, vector<147x64xbf16>
    %cst = arith.constant dense<0.000000e+00> : vector<64x64xf32>
    %2 = tpu.matmul %0, %1, %cst {dimension_numbers = #tpu.dot_dimension_numbers<[1], [0], [0], [1], [0, 0, 1, 1], [], []>} : vector<64x147xbf16>, vector<147x64xbf16>, vector<64x64xf32> -> vector<64x64xf32>
    %cst_3 = arith.constant dense<0.000000e+00> : vector<64xf32>
    %3 = vector.multi_reduction <add>, %2, %cst_3 [0] : vector<64x64xf32> to vector<64xf32>
    %4 = vector.shape_cast %3 : vector<64xf32> to vector<1x64xf32>
    %c0_4 = arith.constant 0 : index
    %c0_5 = arith.constant 0 : index
    %5 = vector.load %arg4[%c0_4, %c0_5] : memref<8x64xf32, #tpu.memory_space<vmem>>, vector<1x64xf32>
    tpu.vector_store %arg4[%c0_4, %c0_5], %4 {strides = array<i32>} : memref<8x64xf32, #tpu.memory_space<vmem>>, vector<1x64xf32>,
    %6 = arith.mulf %2, %2 : vector<64x64xf32>
    %cst_6 = arith.constant dense<0.000000e+00> : vector<64xf32>
    %7 = vector.multi_reduction <add>, %6, %cst_6 [0] : vector<64x64xf32> to vector<64xf32>
    %8 = vector.shape_cast %7 : vector<64xf32> to vector<1x64xf32>
    %c1 = arith.constant 1 : index
    %c0_7 = arith.constant 0 : index
    %9 = vector.load %arg4[%c1, %c0_7] : memref<8x64xf32, #tpu.memory_space<vmem>>, vector<1x64xf32>
    tpu.vector_store %arg4[%c1, %c0_7], %8 {strides = array<i32>} : memref<8x64xf32, #tpu.memory_space<vmem>>, vector<1x64xf32>,
    %10 = arith.truncf %2 : vector<64x64xf32> to vector<64x64xbf16>
    %c0_8 = arith.constant 0 : index
    %c0_9 = arith.constant 0 : index
    %11 = vector.load %arg3[%c0_8, %c0_9] : memref<64x64xbf16, #tpu.memory_space<vmem>>, vector<64x64xbf16>
    tpu.vector_store %arg3[%c0_8, %c0_9], %10 {strides = array<i32>} : memref<64x64xbf16, #tpu.memory_space<vmem>>, vector<64x64xbf16>,
    return
  }
  func.func @transform_0(%arg0: i32) -> (i32, i32) {
    %c0_i32 = arith.constant 0 : i32
    %c0_i32_0 = arith.constant 0 : i32
    return %arg0, %c0_i32 : i32, i32
  }
  func.func @transform_1(%arg0: i32) -> (i32, i32) {
    %c0_i32 = arith.constant 0 : i32
    %c0_i32_0 = arith.constant 0 : i32
    %c0_i32_1 = arith.constant 0 : i32
    return %c0_i32, %c0_i32_0 : i32, i32
  }
  func.func @transform_2(%arg0: i32) -> (i32, i32) {
    %c0_i32 = arith.constant 0 : i32
    %c0_i32_0 = arith.constant 0 : i32
    return %arg0, %c0_i32 : i32, i32
  }
  func.func @transform_3(%arg0: i32) -> (i32, i32) {
    %c0_i32 = arith.constant 0 : i32
    %c0_i32_0 = arith.constant 0 : i32
    return %arg0, %c0_i32 : i32, i32
  }
}

</mosaic_0001>

<bundles_post_ra>
// kernel: tpu_custom_call.1
= control target key start
LH: loop header
LB: loop body
LE: loop exit
PB: predicated region body
PF: predicated region fallthrough
CT: control target
= control target key end

     0   :  { %9 = vsyncpa [#allocation3], 0  ;;  %s988_s0 = inlined_call_operand.vmem [shape: bf16[128,147], index: 0, kind: input, shape index: {}]   ;;  %s989_s1 = inlined_call_operand.vmem [shape: bf16[147,64], index: 1, kind: input, shape index: {}]   ;;  %s990_s2 = inlined_call_operand.vmem [shape: bf16[128,64], index: 2, kind: output, shape index: {0}]   ;;  %s991_s3 = inlined_call_operand.hbm [shape: f32[16,64], index: 3, kind: output, shape index: {1}]  }
   0x1   :  { %11 = vsyncpa [#allocation3 + $0x1], 0  ;;  %s817_s12 = smov 0   ;;  %s819_s13 = smov 0  }
   0x2   :  { %s821_s14 = smov 0   ;;  %s823_s15 = smov 0  }
   0x3 LB: > { %s838_s16 = sadd.s32 4294967295, %s792_s15   ;;  %s596_s17 = sadd.s32 4294967294, %s792_s15   ;;  %s792_s15 = sphi %s823_s15, %s997_s15   ;;  %s788_s14 = sphi %s821_s14, %s996_s14   ;;  %s784_s13 = sphi %s819_s13, %s995_s13   ;;  %s780_s12 = sphi %s817_s12, %s994_s12  }
   0x4   : > { %s842_s18 = sadd.s32 1, %s792_s15   ;;  %s97_s19 = sadd.s32 1, %s788_s14 }
   0x5   : > { %s94_s20 = ssub.s32 %s792_s15, %s842_s18  ;;  %p107_p0 = scmp.ne.s32.totalorder %s788_s14, %s784_s13 }
   0x6   : > { %p95_p1 = scmp.eq.s32.totalorder %s94_s20, 0  ;;  %p108_p2 = scmp.eq.s32.totalorder %s838_s16, 1 }
   0x7   : > { %p113_p3 = scmp.ne.s32.totalorder %s784_s13, %s780_s12  ;;  %p114_p4 = scmp.eq.s32.totalorder %s596_s17, 1 }
   0x8   : > { %s853_s21 = scalar_select %p95_p1, %s788_s14, %s97_s19  }
   0x9   : > { %p855_p5 = por %p108_p2, %p107_p0  ;;  %p859_p6 = por %p114_p4, %p113_p3 }
   0xa   : > { %p599_p7 = scmp.ge.s32.totalorder %s792_s15, 1  ;;  %p145_p8 = scmp.lt.s32.totalorder %s792_s15, 3 }
   0xc   : > { %p146_p9 = pnand %p599_p7, %p145_p8 }
   0xd   : > { %s601_s30 = sshll.u32 (!%p146_p9), %s838_s16, 3  ;;  %s637_s10 = sshll.u32 (!%p146_p9), %s838_s16, 7 }
   0xe   : > { %149 = sbr.rel (%p146_p9) target bundleno = 303 (0x12f), region = 28  ;;  %p176_p10 = scmp.lt.s32.totalorder (!%p146_p9), %s601_s30, 15 }
   0xf   : > { %s510_s24 = scalar_lea.hbm (!%p146_p9), %s991_s3, %s637_s10  ;;  %s796_s27 = smov (!%p146_p9), [#allocation2]  }
  0x10   : > { %s736_s16 = sshll.u32 (!%p146_p9), %s796_s27, 4  ;;  %s737_s16 = int_to_ptr.vmem [resolvable:$false] %s736_s16 }
  0x11   : > { %s738_s28 = scalar_lea.vmem (!%p146_p9), %s737_s16, 256 }
  0x13   : > { %v710_v0 = vld [vmem:[%s989_s1 + $0x38] sm:$0xff]   ;;  %v794_v1 = vmov 0   ;;  %v711_v2 = vld [vmem:[%s989_s1 + $0x30] sm:$0xff]   ;;  %v712_v3 = vld [vmem:[%s989_s1 + $0x28] sm:$0xff]   ;;  %s999_s30 = smov (!%p176_p10, %s601_s30), 15  ;;  %vm309_vm0 = vcmask 154624  }
  0x14   : > { %329 = vmatprep.subr.bf16.mxu0 %v794_v1  ;;  %649 = vmatprep.subr.bf16.mxu1 %v794_v1  ;;  %v713_v4 = vld [vmem:[%s989_s1 + $0x20] sm:$0xff]   ;;  %s640_s6 = sshll.u32 %s999_s30, 3  ;;  %v714_v5 = vld [vmem:[%s989_s1 + $0x18] sm:$0xff]   ;;  %v715_v8 = vld [vmem:[%s989_s1 + $0x10] sm:$0xff]   ;;  %vm322_vm1 = vcmask 1040384   ;;  %vm323_vm2 = vcmask 1041408  }
  0x15   : > { %330 = vmatpush1.bf16.msra.mxu0 %v710_v0  ;;  %659 = vmatpush1.bf16.msra.mxu1 %v710_v0  ;;  %s884_s9 = scalar_lea.vmem %s988_s0, %s640_s6  ;;  %v716_v9 = vld [vmem:[%s989_s1 + $0x8] sm:$0xff]   ;;  %v795_v10 = vmov 65535   ;;  %v717_v12 = vld [vmem:[%s989_s1] sm:$0xff]   ;;  %s605_s5 = sshll.u32 %s999_s30, 2  ;;  %vm480_vm3 = vcmask 519168   ;;  %vm394_vm4 = vcmask 523264  }
  0x16   : > { %331 = vmatprep.subr.bf16.mxu0 %v794_v1  ;;  %650 = vmatprep.subr.bf16.mxu1 %v794_v1  ;;  %v722_v6 = vld [vmem:[%s884_s9 + $0x4] ss:$8 sps:$4 sm:$0xff]   ;;  %v324_v11 = vsel %vm322_vm1, 4294967295, %v795_v10  ;;  %v718_v13 = vld [vmem:[%s989_s1 + $0x48] ss:$0 sps:$4 sm:$0x33]   ;;  %s920_s8 = scalar_lea.vmem %s990_s2, %s605_s5 }
  0x17   : > { %v725_v7 = vld [vmem:[%s884_s9 + $0x24] ss:$8 sps:$4 sm:$0xff]   ;;  %624 = vmatprep.mubr.msk.bf16.mxu0 %vm309_vm0, %v722_v6  ;;  %v325_v14 = vsel %vm323_vm2, %v324_v11, 0  ;;  %v720_v17 = vld [vmem:[%s884_s9] ss:$8 sps:$4 sm:$0xff]   ;;  %s172_s30 = sand.u32 1, %s784_s13  }
  0x18   : > { %626 = vmatprep.mubr.msk.bf16.mxu1 %vm309_vm0, %v725_v7  ;;  %v327_v15 = vand.u32 %v718_v13, %v325_v14  ;;  %v719_v16 = vld [vmem:[%s989_s1 + $0x40] sm:$0xff]   ;;  %v726_v19 = vld [vmem:[%s884_s9 + $0x14] ss:$8 sps:$4 sm:$0xff]   ;;  %v728_v21 = vld [vmem:[%s884_s9 + $0x10] ss:$8 sps:$4 sm:$0xff]   ;;  %vm416_vm5 = vcmask 516096  }
  0x19   : > { %332 = vmatpush1.bf16.msra.mxu0 %v711_v2  ;;  %660 = vmatpush1.bf16.msra.mxu1 %v711_v2  ;;  %v723_v18 = vld [vmem:[%s884_s9 + $0x20] ss:$8 sps:$4 sm:$0xff]   ;;  %v729_v20 = vld [vmem:[%s884_s9 + $0x34] ss:$8 sps:$4 sm:$0xff]   ;;  %v731_v22 = vld [vmem:[%s884_s9 + $0x30] ss:$8 sps:$4 sm:$0xff]  }
  0x1a   : > { %333 = vmatprep.subr.bf16.mxu0 %v794_v1  ;;  %651 = vmatprep.subr.bf16.mxu1 %v794_v1  ;;  %s600_s9 = sshll.u32 %s172_s30, 3  ;;  %s495_s25 = scalar_lea.sflag [#allocation3], %s172_s30 }
  0x1b   : > { %s174_s11 = scalar_lea.vmem [#allocation2], %s600_s9 }
  0x1c   : > { %s512_s17 = sshll.u32 %s174_s11, 4  ;;  %s513_s17 = int_to_ptr.vmem [resolvable:$true] %s512_s17 }
  0x1d   : > { %334 = vmatpush1.bf16.msra.mxu0 %v712_v3  ;;  %661 = vmatpush1.bf16.msra.mxu1 %v712_v3  ;;  %s732_s26 = scalar_lea.vmem %s513_s17, 128  ;;  %p739_p0 = scmp.lt.s32.totalorder %s513_s17, %s737_s16 }
  0x1e   : > { %335 = vmatprep.subr.bf16.mxu0 %v794_v1  ;;  %652 = vmatprep.subr.bf16.mxu1 %v794_v1  ;;  %p733_p11 = scmp.ne.s32.totalorder %s513_s17, %s732_s26  ;;  %p740_p1 = scmp.lt.s32.totalorder %s738_s28, %s732_s26 }
  0x20   : > { %p734_p12 = pnand %p733_p11, %p855_p5  ;;  %p741_p2 = por %p740_p1, %p739_p0 }
  0x21   : > { %336 = vmatpush1.bf16.msra.mxu0 %v713_v4  ;;  %662 = vmatpush1.bf16.msra.mxu1 %v713_v4 }
  0x22   : > { %337 = vmatprep.subr.bf16.mxu0 %v794_v1  ;;  %653 = vmatprep.subr.bf16.mxu1 %v794_v1  ;;  %p735_p13 = pneg %p734_p12 }
  0x24   : > { %p742_p3 = pnand %p741_p2, %p735_p13 }
  0x25   : > { %338 = vmatpush1.bf16.msra.mxu0 %v714_v5  ;;  %663 = vmatpush1.bf16.msra.mxu1 %v714_v5 }
  0x26   : > { %339 = vmatprep.subr.bf16.mxu0 %v794_v1  ;;  %654 = vmatprep.subr.bf16.mxu1 %v794_v1 }
  0x29   : > { %340 = vmatpush1.bf16.msra.mxu0 %v715_v8  ;;  %664 = vmatpush1.bf16.msra.mxu1 %v715_v8 }
  0x2a   : > { %341 = vmatprep.subr.bf16.mxu0 %v794_v1  ;;  %655 = vmatprep.subr.bf16.mxu1 %v794_v1 }
  0x2d   : > { %342 = vmatpush1.bf16.msra.mxu0 %v716_v9  ;;  %665 = vmatpush1.bf16.msra.mxu1 %v716_v9 }
  0x2e   : > { %343 = vmatprep.subr.bf16.mxu0 %v794_v1  ;;  %656 = vmatprep.subr.bf16.mxu1 %v794_v1 }
  0x31   : > { %344 = vmatpush1.bf16.msra.mxu0 %v717_v12  ;;  %666 = vmatpush1.bf16.msra.mxu1 %v717_v12 }
  0x32   : > { %357 = vmatprep.subr.bf16.mxu0 %v794_v1  ;;  %657 = vmatprep.subr.bf16.mxu1 %v794_v1 }
  0x35   : > { %358 = vmatpush2.bf16.msra.mxu0 %v327_v15  ;;  %667 = vmatpush2.bf16.msra.mxu1 %v327_v15 }
  0x36   : > { %359 = vmatprep.subr.bf16.mxu0 %v794_v1  ;;  %658 = vmatprep.subr.bf16.mxu1 %v794_v1 }
  0x39   : > { %360 = vmatpush2.bf16.msra.mxu0 %v719_v16  ;;  %668 = vmatpush2.bf16.msra.mxu1 %v719_v16 }
  0x3c   : > { %362 = vmatmul.mubr.bf16.vlgmr.msra.gmra.mxu0 %v720_v17  ;;  %378 = vmatmul.mubr.bf16.vlgmr.msra.gmra.mxu1 %v723_v18 }
  0x3d   : > { %625 = vmatprep.mubr.msk.bf16.mxu0 %vm309_vm0, %v726_v19  ;;  %627 = vmatprep.mubr.msk.bf16.mxu1 %vm309_vm0, %v729_v20 }
  0x44   : > { %370 = vmatmul.mubr.bf16.gmra.mxu0 %v728_v21  ;;  %386 = vmatmul.mubr.bf16.gmra.mxu1 %v731_v22 }
  0xfc   : > { %v363_v23 = vpop.f32.mrf.mxu0  ;;  %v379_v24 = vpop.f32.mrf.mxu1 }
  0xfd   : > { %v641_v25 = vpack.c.bf16 %v363_v23, %v363_v23  ;;  %v645_v27 = vpack.c.bf16 %v379_v24, %v379_v24  ;;  %v418_v36 = vmul.f32 %v363_v23, %v363_v23  ;;  %v395_v38 = vsel %vm394_vm4, %v363_v23, 0.0 }
  0xfe   : > { %v365_v26 = vpop.f32.mrf.mxu0  ;;  %v381_v28 = vpop.f32.mrf.mxu1  ;;  %v422_v55 = vmul.f32 %v379_v24, %v379_v24  ;;  %v402_v0 = vsel %vm394_vm4, %v379_v24, 0.0 }
  0xff   : > { %481 = vst.msk [vmem:[%s920_s8] sm:$0xf] %vm480_vm3, %v641_v25  ;;  %485 = vst.msk [vmem:[%s920_s8 + $0x10] sm:$0xf] %vm480_vm3, %v645_v27  ;;  %v426_v49 = vsel %vm394_vm4, %v418_v36, 0.0 }
 0x100   : > { %v366_v29 = vpop.f32.mrf.mxu0  ;;  %v382_v30 = vpop.f32.mrf.mxu1  ;;  %v433_v5 = vsel %vm394_vm4, %v422_v55, 0.0 }
 0x101   : > { %v419_v31 = vmul.f32 %v366_v29, %v366_v29  ;;  %v642_v32 = vpack.c.bf16 %v366_v29, %v366_v29  ;;  %v646_v34 = vpack.c.bf16 %v382_v30, %v382_v30  ;;  %v396_v37 = vsel %vm394_vm4, %v366_v29, 0.0 }
 0x102   : > { %v368_v33 = vpop.f32.mrf.mxu0  ;;  %v384_v35 = vpop.f32.mrf.mxu1  ;;  %v397_v45 = vadd.f32 %v396_v37, %v395_v38  ;;  %v423_v1 = vmul.f32 %v382_v30, %v382_v30  ;;  %v404_v6 = vsel %vm394_vm4, %v382_v30, 0.0 }
 0x103   : > { %482 = vst.msk [vmem:[%s920_s8 + $0x4] sm:$0xf] %vm480_vm3, %v642_v32  ;;  %486 = vst.msk [vmem:[%s920_s8 + $0x14] sm:$0xf] %vm480_vm3, %v646_v34  ;;  %v427_v41 = vsel %vm394_vm4, %v419_v31, 0.0 }
 0x104   : > { %v371_v39 = vpop.f32.mrf.mxu0  ;;  %v387_v40 = vpop.f32.mrf.mxu1  ;;  %v428_v51 = vadd.f32 %v427_v41, %v426_v49  ;;  %v435_v10 = vsel %vm394_vm4, %v423_v1, 0.0 }
 0x105   : > { %v398_v42 = vsel %vm394_vm4, %v371_v39, 0.0  ;;  %v420_v43 = vmul.f32 %v371_v39, %v371_v39  ;;  %v643_v44 = vpack.c.bf16 %v371_v39, %v371_v39  ;;  %v647_v47 = vpack.c.bf16 %v387_v40, %v387_v40 }
 0x106   : > { %v373_v46 = vpop.f32.mrf.mxu0  ;;  %v389_v48 = vpop.f32.mrf.mxu1  ;;  %v399_v52 = vadd.f32 %v398_v42, %v397_v45  ;;  %v424_v7 = vmul.f32 %v387_v40, %v387_v40  ;;  %v406_v11 = vsel %vm394_vm4, %v387_v40, 0.0 }
 0x107   : > { %v429_v50 = vsel %vm394_vm4, %v420_v43, 0.0  ;;  %483 = vst.msk [vmem:[%s920_s8 + $0x8] sm:$0xf] %vm480_vm3, %v643_v44  ;;  %487 = vst.msk [vmem:[%s920_s8 + $0x18] sm:$0xf] %vm480_vm3, %v647_v47 }
 0x108   : > { %v374_v53 = vpop.f32.mrf.mxu0  ;;  %v390_v54 = vpop.f32.mrf.mxu1  ;;  %v430_v59 = vadd.f32 %v429_v50, %v428_v51  ;;  %v437_v15 = vsel %vm394_vm4, %v424_v7, 0.0 }
 0x109   : > { %v400_v56 = vsel %vm394_vm4, %v374_v53, 0.0  ;;  %v421_v57 = vmul.f32 %v374_v53, %v374_v53  ;;  %v644_v58 = vpack.c.bf16 %v374_v53, %v374_v53  ;;  %v648_v62 = vpack.c.bf16 %v390_v54, %v390_v54 }
 0x10a   : > { %v401_v60 = vadd.f32 %v400_v56, %v399_v52  ;;  %v376_v61 = vpop.f32.mrf.mxu0  ;;  %v392_v63 = vpop.f32.mrf.mxu1  ;;  %v425_v12 = vmul.f32 %v390_v54, %v390_v54  ;;  %v408_v16 = vsel %vm394_vm4, %v390_v54, 0.0 }
 0x10b   : > { %v431_v2 = vsel %vm394_vm4, %v421_v57, 0.0  ;;  %484 = vst.msk [vmem:[%s920_s8 + $0xc] sm:$0xf] %vm480_vm3, %v644_v58  ;;  %488 = vst.msk [vmem:[%s920_s8 + $0x1c] sm:$0xf] %vm480_vm3, %v648_v62 }
 0x10c   : > { %v403_v3 = vadd.f32 %v402_v0, %v401_v60  ;;  %v432_v4 = vadd.f32 %v431_v2, %v430_v59  ;;  %v439_v19 = vsel %vm394_vm4, %v425_v12, 0.0 }
 0x10e   : > { %v434_v8 = vadd.f32 %v433_v5, %v432_v4  ;;  %v405_v9 = vadd.f32 %v404_v6, %v403_v3 }
 0x110   : > { %v407_v13 = vadd.f32 %v406_v11, %v405_v9  ;;  %v436_v14 = vadd.f32 %v435_v10, %v434_v8 }
 0x112   : > { %v409_v17 = vadd.f32 %v408_v16, %v407_v13  ;;  %v438_v18 = vadd.f32 %v437_v15, %v436_v14 }
 0x114   : > { %v410_v20 = vrot.slane %v409_v17, 4  ;;  %v440_v21 = vadd.f32 %v439_v19, %v438_v18 }
 0x116   : > { %v411_v22 = vadd.f32 %v410_v20, %v409_v17  ;;  %v441_v23 = vrot.slane %v440_v21, 4 }
 0x118   : > { %v412_v24 = vrot.slane %v411_v22, 2  ;;  %v442_v25 = vadd.f32 %v441_v23, %v440_v21 }
 0x11a   : > { %v413_v26 = vadd.f32 %v412_v24, %v411_v22  ;;  %v443_v27 = vrot.slane %v442_v25, 2 }
 0x11c   : > { %v414_v28 = vrot.slane %v413_v26, 1  ;;  %v444_v29 = vadd.f32 %v443_v27, %v442_v25 }
 0x11e   : > { %v415_v30 = vadd.f32 %v414_v28, %v413_v26  ;;  %v445_v31 = vrot.slane %v444_v29, 1 }
 0x120   : > { %417 = vst.msk [vmem:[%s174_s11] sm:$0x1] %vm416_vm5, %v415_v30  ;;  %v446_v32 = vadd.f32 %v445_v31, %v444_v29 }
 0x122   : > { %447 = vst.msk [vmem:[%s174_s11 + $0x1] sm:$0x1] %vm416_vm5, %v446_v32 }
 0x123   : > { %745 = shalt.err (!%p742_p3)
}
 0x124   : > { %s746_s29 = scalar_lea.hbm %s510_s24, 128  ;;  %s750_s6 = scalar_lea.hbm %s991_s3, 256 }
 0x125   : > { %p747_p4 = scmp.ne.s32.totalorder %s510_s24, %s746_s29  ;;  %p751_p9 = scmp.lt.s32.totalorder %s510_s24, %s991_s3 }
 0x126   : > { %p752_p10 = scmp.lt.s32.totalorder %s750_s6, %s746_s29 }
 0x127   : > { %p748_p7 = pnand %p747_p4, %p855_p5 }
 0x128   : > { %p753_p11 = por %p752_p10, %p751_p9 }
 0x129   : > { %p749_p8 = pneg %p748_p7 }
 0x12b   : > { %p754_p12 = pnand %p753_p11, %p749_p8 }
 0x12d   : > { %757 = shalt.err (!%p754_p12)
}
 0x12e   : > { %669 = dma.vmem_to_hbm [thread:$0]  (%p855_p5), %s513_s17, 128, %s510_s24, %s495_s25  }
 0x12f PF: > { %p675_p13 = scmp.ge.s32.totalorder %s792_s15, 2  ;;  %s532_s30 = sand.u32 1, %s780_s12  }
 0x130   : > { %s533_s9 = scalar_lea.sflag [#allocation3], %s532_s30 }
 0x131   : > { %p672_p0 = pnand %p675_p13, %p859_p6 }
 0x133   : > { %p673_p1 = pneg %p672_p0 }
 0x135   : > { %775 = dma.done.wait (%p673_p1), %s533_s9, 128  }
 0x136   : > { %777 = vsyncadd (%p673_p1), %s533_s9, 4294967168  ;;  %p14_p2 = scmp.ge.s32.totalorder %s842_s18, 4   ;;  %s994_s12 = smov %s784_s13 }
 0x137   : > { %s995_s13 = smov %s788_s14  ;;  %s996_s14 = smov %s853_s21 }
 0x138   : > { %s997_s15 = smov %s842_s18  ;;  %16 = sbr.rel (!%p14_p2) target bundleno = 3 (0x3), region = 75 }
 0x13d   :  { %538 = vsyncpa [#allocation3], 1 }
 0x13e   :  { %540 = vsyncpa [#allocation3 + $0x1], 1 }

</bundles_post_ra>
